<compile_context>
chip_gen: v7x
topology: tpu7x:2x2x1
jax: 0.10.0
libtpu: 0.0.40
codegen_flags: <defaults>
</compile_context>

<pallas_src>
import functools

import jax
import jax.numpy as jnp
from jax import lax
from jax.experimental import pallas as pl
from jax.experimental.pallas import tpu as pltpu


def _round_up(x, m):
    return (x + m - 1) // m * m


def _vmem_capacity_bytes():
    """Physical VMEM capacity of the current TPU generation (conservative fallback)."""
    try:
        info = pltpu.get_tpu_info()
        cap = getattr(info, "vmem_capacity_bytes", None)
        if cap:
            return int(cap)
    except Exception:
        pass
    return 64 << 20  # v7x-sized fallback; safe on every generation.


def _choose_hw_tile(hw_pad, c, itemsize, target_block_bytes):
    """Largest multiple of 128 dividing hw_pad with C*T*itemsize under budget."""
    max_elems = max(128, target_block_bytes // max(1, c * itemsize))
    t_cap = max(128, (max_elems // 128) * 128)
    if hw_pad <= t_cap:
        return hw_pad
    k = hw_pad // 128
    best = 128
    for d in range(1, k + 1):
        if k % d == 0:
            t = d * 128
            if best < t <= t_cap:
                best = t
    return best


# --------------------------------------------------------------------------
# Single-pass resident-slab kernel: 1 HBM read + 1 HBM write of x per batch.
# --------------------------------------------------------------------------
def _fused_kernel(x_ref, w_ref, b_ref, o_ref, *, inv_hw):
    # x_ref/o_ref: (1, C, HW)   w_ref: (C, C) f32   b_ref: (C, 1) f32
    x = x_ref[0]                                   # (C, HW), I/O dtype
    xf = x.astype(jnp.float32)
    pooled = (jnp.max(xf, axis=-1, keepdims=True)
              + jnp.sum(xf, axis=-1, keepdims=True) * inv_hw)      # (C, 1)
    logits = jnp.dot(w_ref[...], pooled,
                     preferred_element_type=jnp.float32) + b_ref[...]
    scale = jax.nn.sigmoid(logits)                 # (C, 1) f32
    if o_ref.dtype == jnp.bfloat16:
        # Native bf16 multiply (v6e/v7x VPU); still correct on v5e.
        o_ref[0] = x * scale.astype(jnp.bfloat16)
    else:
        o_ref[0] = (xf * scale).astype(o_ref.dtype)


# --------------------------------------------------------------------------
# Two-pass fallback: Pass 1 fused max+sum reduction -> pooled (B, C, 1).
# (1x1 conv + sigmoid hoisted out of the kernel.)
# --------------------------------------------------------------------------
def _reduce_kernel(x_ref, pooled_ref, max_sc, sum_sc, *,
                   need_mask, last_start, hw_valid, inv_hw):
    t = pl.program_id(1)
    last = pl.num_programs(1) - 1

    @pl.when(t == 0)
    def _():
        max_sc[...] = jnp.full_like(max_sc, -jnp.inf)
        sum_sc[...] = jnp.zeros_like(sum_sc)

    x = x_ref[0].astype(jnp.float32)               # (C, T), f32 math

    if need_mask:
        # Padded lanes are zeros: the sum is unaffected (mean divides by the
        # true HW); only the max needs masking, and only on the final tile.
        @pl.when(t != last)
        def _():
            max_sc[...] = jnp.maximum(max_sc[...],
                                      jnp.max(x, axis=-1, keepdims=True))
            sum_sc[...] = sum_sc[...] + jnp.sum(x, axis=-1, keepdims=True)

        @pl.when(t == last)
        def _():
            pos = last_start + lax.broadcasted_iota(jnp.int32, x.shape, 1)
            x_mx = jnp.where(pos < hw_valid, x, -jnp.inf)
            max_sc[...] = jnp.maximum(max_sc[...],
                                      jnp.max(x_mx, axis=-1, keepdims=True))
            sum_sc[...] = sum_sc[...] + jnp.sum(x, axis=-1, keepdims=True)
    else:
        max_sc[...] = jnp.maximum(max_sc[...],
                                  jnp.max(x, axis=-1, keepdims=True))
        sum_sc[...] = sum_sc[...] + jnp.sum(x, axis=-1, keepdims=True)

    @pl.when(t == last)
    def _():
        pooled_ref[0] = max_sc[...] + sum_sc[...] * inv_hw


# --------------------------------------------------------------------------
# Two-pass fallback: Pass 2, out = x * scale.
# --------------------------------------------------------------------------
def _apply_kernel(x_ref, scale_ref, o_ref):
    # x_ref/o_ref: (1, C, T)   scale_ref: (1, C, 1) f32
    x = x_ref[0]
    s = scale_ref[0]
    if o_ref.dtype == jnp.bfloat16:
        o_ref[0] = x * s.astype(jnp.bfloat16)
    else:
        o_ref[0] = (x.astype(jnp.float32) * s).astype(o_ref.dtype)


def channel_attention2(x_nchw, weight, bias, *,
                       single_pass=None, target_block_bytes=None):
    """x_nchw: (B, C, H, W) f32/bf16; weight: (C, C[,1,1]); bias: (C,)."""
    B, C, H, W = x_nchw.shape
    HW = H * W
    orig_dtype = x_nchw.dtype
    isz = jnp.dtype(orig_dtype).itemsize

    w2 = weight.reshape(C, C).astype(jnp.float32)
    b2 = bias.reshape(C, 1).astype(jnp.float32)
    x = x_nchw.reshape(B, C, HW)

    cap = _vmem_capacity_bytes()
    budget = int(cap * 0.70)

    # ---- dispatch: single-pass resident slab vs two-pass tiled ----
    slab_in = C * HW * isz
    smalls = 2 * C * C * 4 + 8 * C * 128 * 4 + (64 << 10)   # W (dbl-buf) + lane-padded vectors
    # input + output double-buffered + f32-intermediate headroom + smalls
    est_single = 4 * slab_in + C * HW * 4 + smalls
    if single_pass is None:
        single_pass = est_single <= budget

    if single_pass:
        vmem_limit = int(min(max(est_single + (4 << 20), 16 << 20), int(cap * 0.85)))
        out = pl.pallas_call(
            functools.partial(_fused_kernel, inv_hw=1.0 / HW),
            out_shape=jax.ShapeDtypeStruct((B, C, HW), orig_dtype),
            grid_spec=pltpu.PrefetchScalarGridSpec(
                num_scalar_prefetch=0,
                grid=(B,),
                in_specs=[
                    pl.BlockSpec((1, C, HW), lambda b: (b, 0, 0)),   # x slab
                    pl.BlockSpec((C, C), lambda b: (0, 0)),          # conv weight
                    pl.BlockSpec((C, 1), lambda b: (0, 0)),          # conv bias
                ],
                out_specs=pl.BlockSpec((1, C, HW), lambda b: (b, 0, 0)),
            ),
            compiler_params=pltpu.CompilerParams(
                dimension_semantics=("parallel",),
                vmem_limit_bytes=vmem_limit),
        )(x, w2, b2)
        return out.reshape(B, C, H, W)

    # ---- two-pass fallback (very large per-batch slabs) ----
    HW_pad = _round_up(HW, 128)
    need_mask = HW_pad != HW
    if need_mask:
        # Only reached when a huge feature map also has HW % 128 != 0 (rare);
        # costs one extra copy of x but keeps lane-dense stores everywhere.
        x_p = jnp.pad(x, ((0, 0), (0, 0), (0, HW_pad - HW)))
    else:
        x_p = x

    if target_block_bytes is None:
        # apply pass holds ~4x the block (in + out, double-buffered)
        target_block_bytes = max(1 << 20, budget // 8)
    T = _choose_hw_tile(HW_pad, C, isz, target_block_bytes)
    n_t = HW_pad // T

    blk = C * T * isz
    est_reduce = 2 * blk + C * T * 4 + smalls
    est_apply = 4 * blk + C * T * 4 + smalls
    vmem_limit = int(min(max(max(est_reduce, est_apply) + (4 << 20), 16 << 20),
                         int(cap * 0.85)))

    # Pass 1: fused global max+sum -> pooled (B, C, 1) in f32.
    pooled = pl.pallas_call(
        functools.partial(_reduce_kernel, need_mask=need_mask,
                          last_start=(n_t - 1) * T, hw_valid=HW, inv_hw=1.0 / HW),
        out_shape=jax.ShapeDtypeStruct((B, C, 1), jnp.float32),
        grid_spec=pltpu.PrefetchScalarGridSpec(
            num_scalar_prefetch=0,
            grid=(B, n_t),
            in_specs=[pl.BlockSpec((1, C, T), lambda b, t: (b, 0, t))],
            out_specs=pl.BlockSpec((1, C, 1), lambda b, t: (b, 0, 0)),
            scratch_shapes=[pltpu.VMEM((C, 1), jnp.float32),   # running max
                            pltpu.VMEM((C, 1), jnp.float32)],  # running sum
        ),
        compiler_params=pltpu.CompilerParams(
            dimension_semantics=("parallel", "arbitrary"),
            vmem_limit_bytes=vmem_limit),
    )(x_p)

    # Hoisted 1x1 conv + sigmoid: a tiny (B,C)x(C,C) matmul in plain XLA.
    scale = jax.nn.sigmoid(pooled[:, :, 0] @ w2.T
                           + bias.reshape(1, C).astype(jnp.float32))
    scale = scale[:, :, None]                      # (B, C, 1) f32

    # Pass 2: out = x * scale, tiled over HW, fully parallel.
    out = pl.pallas_call(
        _apply_kernel,
        out_shape=jax.ShapeDtypeStruct((B, C, HW_pad), orig_dtype),
        grid_spec=pltpu.PrefetchScalarGridSpec(
            num_scalar_prefetch=0,
            grid=(B, n_t),
            in_specs=[pl.BlockSpec((1, C, T), lambda b, t: (b, 0, t)),
                      pl.BlockSpec((1, C, 1), lambda b, t: (b, 0, 0))],
            out_specs=pl.BlockSpec((1, C, T), lambda b, t: (b, 0, t)),
        ),
        compiler_params=pltpu.CompilerParams(
            dimension_semantics=("parallel", "parallel"),
            vmem_limit_bytes=vmem_limit),
    )(x_p, scale)

    if need_mask:
        out = out[:, :, :HW]
    return out.reshape(B, C, H, W)


def _reference(x, weight, bias):
    # Pure-JAX reference mirroring the PyTorch module exactly (f32 math).
    xf = x.astype(jnp.float32)
    mx = jnp.max(xf, axis=(2, 3), keepdims=True)          # AdaptiveMaxPool2d(1)
    av = jnp.mean(xf, axis=(2, 3), keepdims=True)         # AdaptiveAvgPool2d(1)
    pooled = (mx + av)[:, :, 0, 0]                        # (B, C)
    logits = pooled @ weight.reshape(weight.shape[0], -1)[:, :weight.shape[0]].T + bias
    scale = jax.nn.sigmoid(logits)[:, :, None, None]      # (B, C, 1, 1)
    return xf * scale


if __name__ == "__main__":
    key = jax.random.PRNGKey(0)

    # --- main test: f32, auto dispatch (single-pass resident slab) ---
    B, C, H, W = 2, 4, 16, 16
    kx, kw, kb = jax.random.split(key, 3)
    x = jax.random.normal(kx, (B, C, H, W), dtype=jnp.float32)
    weight = jax.random.normal(kw, (C, C), dtype=jnp.float32) * 0.1
    bias = jax.random.normal(kb, (C,), dtype=jnp.float32) * 0.1

    out = jax.block_until_ready(channel_attention2(x, weight, bias))
    ref = _reference(x, weight, bias)
    assert out.shape == (B, C, H, W)
    assert jnp.allclose(out, ref, atol=1e-5, rtol=1e-5), "mismatch (f32 single-pass)"

    # --- forced two-pass path (multi-tile reduce + hoisted gate) ---
    out_tp = jax.block_until_ready(
        channel_attention2(x, weight, bias, single_pass=False,
                           target_block_bytes=2048))
    assert jnp.allclose(out_tp, ref, atol=1e-5, rtol=1e-5), "mismatch (f32 two-pass)"

    # --- forced two-pass with HW not a multiple of 128 (pad + last-tile mask) ---
    B2, C2, H2, W2 = 1, 8, 10, 10
    kx2, kw2, kb2 = jax.random.split(jax.random.PRNGKey(1), 3)
    x2 = jax.random.normal(kx2, (B2, C2, H2, W2), dtype=jnp.float32)
    w2 = jax.random.normal(kw2, (C2, C2), dtype=jnp.float32) * 0.1
    b2_ = jax.random.normal(kb2, (C2,), dtype=jnp.float32) * 0.1
    out2 = jax.block_until_ready(
        channel_attention2(x2, w2, b2_, single_pass=False, target_block_bytes=2048))
    ref2 = _reference(x2, w2, b2_)
    assert jnp.allclose(out2, ref2, atol=1e-5, rtol=1e-5), "mismatch (padded two-pass)"
    # and auto dispatch (single-pass, no padding at all for HW=100)
    out2s = jax.block_until_ready(channel_attention2(x2, w2, b2_))
    assert jnp.allclose(out2s, ref2, atol=1e-5, rtol=1e-5), "mismatch (HW=100 single-pass)"

    # --- bf16 I/O: single-pass (native bf16 gating multiply) and two-pass ---
    B3, C3, H3, W3 = 2, 16, 16, 16
    kx3, kw3, kb3 = jax.random.split(jax.random.PRNGKey(2), 3)
    x3 = jax.random.normal(kx3, (B3, C3, H3, W3), dtype=jnp.float32).astype(jnp.bfloat16)
    w3 = jax.random.normal(kw3, (C3, C3), dtype=jnp.float32) * 0.1
    b3 = jax.random.normal(kb3, (C3,), dtype=jnp.float32) * 0.1
    ref3 = _reference(x3, w3, b3)

    out3 = jax.block_until_ready(channel_attention2(x3, w3, b3))
    assert out3.dtype == jnp.bfloat16
    assert jnp.allclose(out3.astype(jnp.float32), ref3, atol=2e-2, rtol=2e-2), \
        "mismatch (bf16 single-pass)"

    out3tp = jax.block_until_ready(
        channel_attention2(x3, w3, b3, single_pass=False, target_block_bytes=2048))
    assert out3tp.dtype == jnp.bfloat16
    assert jnp.allclose(out3tp.astype(jnp.float32), ref3, atol=2e-2, rtol=2e-2), \
        "mismatch (bf16 two-pass)"

    print("KERNEL_OK")
</pallas_src>

<mosaic_0001>
module attributes {stable_mosaic.version = 11 : i64} {
  func.func @_fused_kernel(%arg0: i32, %arg1: memref<1x4x256xf32, #tpu.memory_space<vmem>>, %arg2: memref<4x4xf32, #tpu.memory_space<vmem>>, %arg3: memref<4x1xf32, #tpu.memory_space<vmem>>, %arg4: memref<1x4x256xf32, #tpu.memory_space<vmem>>) attributes {dimension_semantics = [#tpu.dimension_semantics<parallel>], iteration_bounds = array<i64: 2>, scalar_prefetch = 0 : i64, scratch_operands = 0 : i64, tpu.core_type = #tpu.core_type<tc>, window_params = [{transform_indices = @transform_0, window_bounds = array<i64: 1, 4, 256>}, {pipeline_mode = #tpu.pipeline_mode<synchronous>, transform_indices = @transform_1, window_bounds = array<i64: 4, 4>}, {pipeline_mode = #tpu.pipeline_mode<synchronous>, transform_indices = @transform_2, window_bounds = array<i64: 4, 1>}, {transform_indices = @transform_3, window_bounds = array<i64: 1, 4, 256>}]} {
    %c0 = arith.constant 0 : index
    %c0_0 = arith.constant 0 : index
    %c0_1 = arith.constant 0 : index
    %0 = vector.load %arg1[%c0, %c0_0, %c0_1] : memref<1x4x256xf32, #tpu.memory_space<vmem>>, vector<1x4x256xf32>
    %1 = vector.shape_cast %0 : vector<1x4x256xf32> to vector<4x256xf32>
    %cst = arith.constant dense<0xFF800000> : vector<4xf32>
    %2 = vector.multi_reduction <maximumf>, %1, %cst [1] : vector<4x256xf32> to vector<4xf32>
    %3 = vector.shape_cast %2 : vector<4xf32> to vector<4x1xf32>
    %cst_2 = arith.constant dense<0.000000e+00> : vector<4xf32>
    %4 = vector.multi_reduction <add>, %1, %cst_2 [1] : vector<4x256xf32> to vector<4xf32>
    %5 = vector.shape_cast %4 : vector<4xf32> to vector<4x1xf32>
    %cst_3 = arith.constant 3.906250e-03 : f32
    %6 = vector.broadcast %cst_3 : f32 to vector<4x1xf32>
    %7 = arith.mulf %5, %6 : vector<4x1xf32>
    %8 = arith.addf %3, %7 : vector<4x1xf32>
    %c0_4 = arith.constant 0 : index
    %c0_5 = arith.constant 0 : index
    %9 = vector.load %arg2[%c0_4, %c0_5] : memref<4x4xf32, #tpu.memory_space<vmem>>, vector<4x4xf32>
    %cst_6 = arith.constant dense<0.000000e+00> : vector<4x1xf32>
    %10 = tpu.matmul %9, %8, %cst_6 {dimension_numbers = #tpu.dot_dimension_numbers<[1], [0], [0], [1], [0, 0, 1, 1], [], []>} : vector<4x4xf32>, vector<4x1xf32>, vector<4x1xf32> -> vector<4x1xf32>
    %c0_7 = arith.constant 0 : index
    %c0_8 = arith.constant 0 : index
    %11 = vector.load %arg3[%c0_7, %c0_8] : memref<4x1xf32, #tpu.memory_space<vmem>>, vector<4x1xf32>
    %12 = arith.addf %10, %11 : vector<4x1xf32>
    %13 = arith.negf %12 : vector<4x1xf32>
    %14 = math.exp %13 : vector<4x1xf32>
    %cst_9 = arith.constant 1.000000e+00 : f32
    %15 = vector.broadcast %cst_9 : f32 to vector<4x1xf32>
    %16 = arith.addf %15, %14 : vector<4x1xf32>
    %17 = arith.divf %15, %16 : vector<4x1xf32>
    %18 = vector.broadcast %17 : vector<4x1xf32> to vector<4x256xf32>
    %19 = arith.mulf %1, %18 : vector<4x256xf32>
    %c0_10 = arith.constant 0 : index
    %c0_11 = arith.constant 0 : index
    %c0_12 = arith.constant 0 : index
    %20 = vector.load %arg4[%c0_10, %c0_11, %c0_12] : memref<1x4x256xf32, #tpu.memory_space<vmem>>, vector<1x4x256xf32>
    %21 = vector.shape_cast %20 : vector<1x4x256xf32> to vector<4x256xf32>
    %22 = vector.shape_cast %19 : vector<4x256xf32> to vector<1x4x256xf32>
    tpu.vector_store %arg4[%c0_10, %c0_11, %c0_12], %22 {strides = array<i32>} : memref<1x4x256xf32, #tpu.memory_space<vmem>>, vector<1x4x256xf32>,
    return
  }
  func.func @transform_0(%arg0: i32) -> (i32, i32, i32) {
    %c0_i32 = arith.constant 0 : i32
    %c0_i32_0 = arith.constant 0 : i32
    %c0_i32_1 = arith.constant 0 : i32
    return %arg0, %c0_i32, %c0_i32_0 : i32, i32, i32
  }
  func.func @transform_1(%arg0: i32) -> (i32, i32) {
    %c0_i32 = arith.constant 0 : i32
    %c0_i32_0 = arith.constant 0 : i32
    %c0_i32_1 = arith.constant 0 : i32
    return %c0_i32, %c0_i32_0 : i32, i32
  }
  func.func @transform_2(%arg0: i32) -> (i32, i32) {
    %c0_i32 = arith.constant 0 : i32
    %c0_i32_0 = arith.constant 0 : i32
    %c0_i32_1 = arith.constant 0 : i32
    return %c0_i32, %c0_i32_0 : i32, i32
  }
  func.func @transform_3(%arg0: i32) -> (i32, i32, i32) {
    %c0_i32 = arith.constant 0 : i32
    %c0_i32_0 = arith.constant 0 : i32
    %c0_i32_1 = arith.constant 0 : i32
    return %arg0, %c0_i32, %c0_i32_0 : i32, i32, i32
  }
}

</mosaic_0001>

<bundles_post_ra>
// kernel: tpu_custom_call.1
= control target key start
LH: loop header
LB: loop body
LE: loop exit
PB: predicated region body
PF: predicated region fallthrough
CT: control target
= control target key end

     0   :  { %8 = vsyncpa [#allocation3], 0  ;;  %s771_s0 = inlined_call_operand.hbm [shape: f32[2,4,256], index: 0, kind: input, shape index: {}]   ;;  %s772_s1 = inlined_call_operand.vmem [shape: f32[4,4], index: 1, kind: input, shape index: {}]   ;;  %s773_s2 = inlined_call_operand.vmem [shape: f32[4,1], index: 2, kind: input, shape index: {}]   ;;  %s774_s3 = inlined_call_operand.hbm [shape: f32[2,4,256], index: 3, kind: output, shape index: {}]  }
   0x1   :  { %10 = vsyncpa [#allocation3 + $0x1], 0 }
   0x2   :  { %11 = vsyncpa [#allocation4], 0 }
   0x3   :  { %13 = vsyncpa [#allocation4 + $0x1], 0  ;;  %s595_s12 = smov 0   ;;  %s597_s13 = smov 0  }
   0x4   :  { %s599_s14 = smov 0   ;;  %s601_s15 = smov 0  }
   0x5 LB: > { %s616_s16 = sadd.s32 4294967295, %s567_s15   ;;  %s388_s17 = sadd.s32 4294967294, %s567_s15   ;;  %s567_s15 = sphi %s601_s15, %s789_s15   ;;  %s563_s14 = sphi %s599_s14, %s788_s14   ;;  %s559_s13 = sphi %s597_s13, %s787_s13   ;;  %s555_s12 = sphi %s595_s12, %s786_s12  }
   0x6   : > { %s620_s18 = sadd.s32 1, %s567_s15   ;;  %s26_s19 = sadd.s32 1, %s563_s14 }
   0x7   : > { %s23_s20 = ssub.s32 %s567_s15, %s620_s18  ;;  %p33_p0 = scmp.ne.s32.totalorder %s563_s14, %s559_s13 }
   0x8   : > { %p24_p1 = scmp.eq.s32.totalorder %s23_s20, 0  ;;  %p34_p2 = scmp.eq.s32.totalorder %s567_s15, 0 }
   0x9   : > { %p39_p3 = scmp.ne.s32.totalorder %s559_s13, %s555_s12  ;;  %p40_p4 = scmp.eq.s32.totalorder %s616_s16, 0 }
   0xa   : > { %s632_s21 = scalar_select %p24_p1, %s563_s14, %s26_s19  }
   0xb   : > { %p634_p5 = por %p34_p2, %p33_p0  ;;  %p638_p6 = por %p40_p4, %p39_p3 }
   0xc   : > { %p105_p7 = scmp.eq.s32.totalorder %s616_s16, 1  ;;  %p111_p8 = scmp.eq.s32.totalorder %s388_s17, 1 }
   0xd   : > { %p426_p10 = scmp.lt.s32.totalorder %s567_s15, 2  ;;  %s137_s26 = sand.u32 1, %s563_s14  }
   0xe   : > { %p645_p11 = por %p105_p7, %p33_p0  ;;  %p649_p12 = por %p111_p8, %p39_p3 }
   0xf   : > { %s405_s27 = sshll.u32 %s567_s15, 7  ;;  %s391_s28 = sshll.u32 %s137_s26, 3 }
  0x10   : > { %s778_s24 = scalar_select %p645_p11, 1, 0 }
  0x11   : > { %s779_s25 = scalar_select %p649_p12, 1, 0 }
  0x12   : > { %s658_s4 = scalar_lea.hbm %s771_s0, %s405_s27  ;;  %s141_s5 = scalar_lea.vmem [#allocation2], %s391_s28 }
  0x13   : > { %s149_s6 = sshll.u32 %s141_s5, 4  ;;  %p662_p13 = pnand %p426_p10, %p634_p5  ;;  %s666_s6 = int_to_ptr.vmem [resolvable:$true] %s149_s6 }
  0x14   : > { %s138_s8 = scalar_lea.sflag [#allocation3], %s137_s26  ;;  %s471_s9 = scalar_lea.hbm %s658_s4, 128 }
  0x15   : > { %p472_p2 = scmp.ne.s32.totalorder %s658_s4, %s471_s9  ;;  %p473_p3 = pneg %p662_p13 }
  0x16   : > { %s476_s17 = scalar_lea.hbm %s771_s0, 256  ;;  %p477_p5 = scmp.lt.u32.totalorder %s658_s4, %s771_s0 }
  0x17   : > { %p474_p4 = pnand %p473_p3, %p472_p2  ;;  %p478_p8 = scmp.lt.u32.totalorder %s476_s17, %s471_s9 }
  0x18   : > { %p480_p9 = scmp.lt.u32.totalorder %s471_s9, %s658_s4 }
  0x19   : > { %p475_p7 = pneg %p474_p4  ;;  %p479_p10 = por %p478_p8, %p477_p5 }
  0x1b   : > { %p481_p0 = por %p480_p9, %p479_p10 }
  0x1d   : > { %p482_p1 = pnand %p481_p0, %p475_p7 }
  0x1f   : > { %485 = shalt.err (!%p482_p1)
}
  0x20   : > { %s486_s22 = scalar_lea.vmem %s666_s6, 128  ;;  %s569_s26 = smov [#allocation2]  }
  0x21   : > { %p487_p2 = scmp.ne.s32.totalorder %s666_s6, %s486_s22  ;;  %s491_s27 = sshll.u32 %s569_s26, 4  ;;  %s492_s27 = int_to_ptr.vmem [resolvable:$false] %s491_s27 }
  0x22   : > { %s493_s28 = scalar_lea.vmem %s492_s27, 256  ;;  %p494_p11 = scmp.lt.s32.totalorder %s666_s6, %s492_s27 }
  0x23   : > { %p489_p4 = pnand %p487_p2, %p473_p3  ;;  %p495_p5 = scmp.lt.s32.totalorder %s493_s28, %s486_s22 }
  0x25   : > { %p490_p12 = pneg %p489_p4  ;;  %p496_p8 = por %p495_p5, %p494_p11 }
  0x27   : > { %p497_p9 = pnand %p496_p8, %p490_p12 }
  0x29   : > { %500 = shalt.err (!%p497_p9)
}
  0x2a   : > { %421 = dma.hbm_to_vmem [thread:$0]  (!%p662_p13), %s658_s4, 128, %s666_s6, %s138_s8  }
  0x2b   : > { %p781_p0 = scmp.lt.s32.totalorder %s567_s15, 3  ;;  %p782_p1 = scmp.ge.s32.totalorder %s567_s15, 1 }
  0x2d   : > { %p155_p3 = pnand %p782_p1, %p781_p0 }
  0x2e   : > { %s700_s29 = sand.u32 (!%p155_p3), 1, %s559_s13  }
  0x2f   : > { %158 = sbr.rel (%p155_p3) target bundleno = 596 (0x254), region = 32  ;;  %s395_s30 = sshll.u32 (!%p155_p3), %s700_s29, 3 }
  0x30   : > { %s161_s5 = scalar_lea.sflag (!%p155_p3), [#allocation3], %s700_s29  ;;  %s164_s7 = scalar_lea.vmem (!%p155_p3), [#allocation2], %s395_s30 }
  0x36   : > { %546 = dma.done.wait (%p638_p6), %s161_s5, 128  }
  0x37   : > { %548 = vsyncadd (%p638_p6), %s161_s5, 4294967168  ;;  %vm191_vm0 = vcmask 1043456   ;;  %v187_v0 = vld [vmem:[%s164_s7] sm:$0xff]  ;;  %v570_v8 = vmov 0.0   ;;  %vm571_vm1 = vmmov 0   ;;  %vm206_vm2 = vcmask 31744  }
  0x38   : > { %v189_v1 = vcombine.high %v187_v0, %v187_v0  ;;  %v197_v2 = vsel %vm191_vm0, %v187_v0, 0.0  ;;  %v192_v4 = vsel %vm191_vm0, %v187_v0, -inf  ;;  %409 = vmatprep.subr.mxu0 %v570_v8  ;;  %411 = vmatprep.mubr.msk.f32.mxu0 %vm571_vm1, %v570_v8  ;;  %v204_v13 = vld [vmem:[%s772_s1] sm:$0xf]  ;;  %v572_v14 = vmov 0   ;;  %s406_s9 = sshll.u32 %s616_s16, 7 }
  0x39   : > { %464 = vset.pattern.permute.xlu1 %v572_v14  ;;  %465 = vset.pattern.permute.xlu0 %v572_v14  ;;  %v205_v15 = vld [vmem:[%s773_s2] sm:$0xf]  ;;  %v573_v23 = vmov 839922192   ;;  %v296_v25 = vlaneseq  ;;  %s186_s10 = scalar_lea.vmem [#allocation5], %s395_s30  ;;  %s727_s20 = scalar_lea.hbm %s774_s3, %s406_s9 }
  0x3a   : > { %v198_v3 = vsel %vm191_vm0, %v189_v1, 0.0  ;;  %v193_v5 = vsel %vm191_vm0, %v189_v1, -inf  ;;  %v294_v24 = vunpack.c.l.s4 %v573_v23  ;;  %s318_s11 = sshll.u32 %s186_s10, 4  ;;  %s304_s22 = scalar_lea.sflag [#allocation4], %s700_s29  ;;  %s729_s11 = int_to_ptr.vmem [resolvable:$true] %s318_s11 }
  0x3b   : > { %v199_v6 = vadd.f32 %v198_v3, %v197_v2  ;;  %v194_v7 = vmax.f32 %v192_v4, %v193_v5  ;;  %v297_v27 = vshrl.u32 %v296_v25, 7  ;;  %s501_s26 = scalar_lea.vmem %s729_s11, 128  ;;  %p783_p11 = scmp.ne.s32.totalorder %s778_s24, 0 }
  0x3c   : > { %v295_v26 = vunpack.c.0.s8 %v294_v24  ;;  %p502_p6 = scmp.ne.s32.totalorder %s729_s11, %s501_s26  ;;  %s574_s16 = smov [#allocation5]  }
  0x3d   : > { %200 = vadd.xlane.f32.xlu0 %v199_v6  ;;  %s505_s27 = sshll.u32 %s574_s16, 4  ;;  %s506_s27 = int_to_ptr.vmem [resolvable:$false] %s505_s27 }
  0x3e   : > { %v298_v28 = vsub.s32 %v295_v26, %v297_v27  ;;  %p503_p12 = pnand %p502_p6, %p783_p11  ;;  %s507_s28 = scalar_lea.vmem %s506_s27, 256 }
  0x3f   : > { %p508_p7 = scmp.lt.s32.totalorder %s729_s11, %s506_s27  ;;  %p509_p10 = scmp.lt.s32.totalorder %s507_s28, %s501_s26 }
  0x40   : > { %p504_p13 = pneg %p503_p12 }
  0x41   : > { %195 = vmax.xlane.f32.xlu0 %v194_v7  ;;  %p510_p2 = por %p509_p10, %p508_p7 }
  0x43   : > { %p511_p4 = pnand %p510_p2, %p504_p13 }
  0xca   : > { %v201_v9 = vpop.xlane.xlu0 %200 }
  0xcb   : > { %v202_v10 = vmul.f32 0.00390625, %v201_v9 }
  0xce   : > { %v196_v11 = vpop.xlane.xlu0 %195 }
  0xcf   : > { %v203_v12 = vadd.f32 %v202_v10, %v196_v11 }
  0xd1   : > { %410 = vmatpush3.msk.msra.mxu0 %vm191_vm0, %v203_v12 }
  0xd2   : > { %412 = vmatmul.mubr.msk.f32.vlgmr.msra.gmra.mrb[0].mxu0 %vm206_vm2, %v204_v13 }
 0x1a5   : > { %v279_v16 = vpop.f32.mrb[0].mxu0 }
 0x1a6   : > { %v280_v17 = vadd.f32 %v279_v16, %v205_v15  ;;  %v413_v18 = vpop.f32.mrb[1].mxu0 }
 0x1a8   : > { %v399_v19 = vmul.f32 -1.442695, %v280_v17 }
 0x1aa   : > { %467 = vpow2.f32 %v399_v19 }
 0x1b4   : > { %v468_v20 = vpop.eup %467 }
 0x1b5   : > { %v286_v21 = vadd.f32 1.0, %v468_v20 }
 0x1b7   : > { %469 = vrcp.f32 %v286_v21 }
 0x1c1   : > { %v470_v22 = vpop.eup %469 }
 0x1c2   : > { %291 = vperm.xlu1 %464, %v470_v22  }
 0x241   : > { %v292_v29 = vpop.permute.xlu1 %291 }
 0x242   : > { %v299_v30 = vrot.slane %v292_v29, %v298_v28 }
 0x244   : > { %v301_v31 = vmul.f32 %v299_v30, %v187_v0 }
 0x246   : > { %302 = vst [vmem:[%s186_s10] sm:$0xff] %v301_v31 }
 0x247   : > { %514 = shalt.err (!%p511_p4)
}
 0x248   : > { %s515_s29 = scalar_lea.hbm %s727_s20, 128  ;;  %s519_s7 = scalar_lea.hbm %s774_s3, 256 }
 0x249   : > { %p516_p5 = scmp.ne.s32.totalorder %s727_s20, %s515_s29  ;;  %p520_p0 = scmp.lt.u32.totalorder %s727_s20, %s774_s3 }
 0x24a   : > { %p521_p1 = scmp.lt.u32.totalorder %s519_s7, %s515_s29  ;;  %p523_p6 = scmp.lt.u32.totalorder %s515_s29, %s727_s20 }
 0x24b   : > { %p517_p8 = pnand %p516_p5, %p783_p11 }
 0x24c   : > { %p522_p3 = por %p521_p1, %p520_p0 }
 0x24d   : > { %p518_p9 = pneg %p517_p8 }
 0x24e   : > { %p524_p12 = por %p523_p6, %p522_p3 }
 0x250   : > { %p525_p13 = pnand %p524_p12, %p518_p9 }
 0x252   : > { %528 = shalt.err (!%p525_p13)
}
 0x253   : > { %416 = dma.vmem_to_hbm [thread:$0]  (%p783_p11), %s729_s11, 128, %s727_s20, %s304_s22  }
 0x254 PF: > { %s330_s6 = sand.u32 1, %s555_s12   ;;  %p784_p7 = scmp.ne.s32.totalorder %s779_s25, 0 }
 0x255   : > { %p785_p10 = scmp.ge.s32.totalorder %s567_s15, 2  ;;  %s331_s8 = scalar_lea.sflag [#allocation4], %s330_s6 }
 0x257   : > { %p423_p2 = pnand %p785_p10, %p784_p7 }
 0x259   : > { %550 = dma.done.wait (!%p423_p2), %s331_s8, 128  }
 0x25a   : > { %552 = vsyncadd (!%p423_p2), %s331_s8, 4294967168  ;;  %p16_p4 = scmp.ge.s32.totalorder %s620_s18, 4   ;;  %s786_s12 = smov %s559_s13 }
 0x25b   : > { %s787_s13 = smov %s563_s14  ;;  %s788_s14 = smov %s632_s21 }
 0x25c   : > { %s789_s15 = smov %s620_s18  ;;  %18 = sbr.rel (!%p16_p4) target bundleno = 5 (0x5), region = 77 }
 0x263   :  { %336 = vsyncpa [#allocation3], 1 }
 0x264   :  { %338 = vsyncpa [#allocation3 + $0x1], 1 }
 0x265   :  { %339 = vsyncpa [#allocation4], 1 }
 0x266   :  { %341 = vsyncpa [#allocation4 + $0x1], 1 }

</bundles_post_ra>
